<compile_context>
chip_gen: v7x
topology: tpu7x:2x2x1
jax: 0.10.0
libtpu: 0.0.40
codegen_flags: <defaults>
</compile_context>

<pallas_src>
import functools

import jax
import jax.numpy as jnp
from jax.experimental import pallas as pl
from jax.experimental.pallas import tpu as pltpu

_EPS = 1e-07
_LANES = 128
_ACC_SUB = 8                      # f32 accumulator sublanes


def _block_rows(sub):
    """Rows per block, sized so f32 intermediates stay ~2-4 MiB per input."""
    try:
        vmem = pltpu.get_tpu_info().vmem_capacity_bytes
        f32_block_bytes = (4 << 20) if vmem >= (96 << 20) else (2 << 20)
    except Exception:  # pragma: no cover - conservative fallback
        f32_block_bytes = 2 << 20
    rows = f32_block_bytes // (_LANES * 4)
    return max(sub, (rows // sub) * sub)


def _silog_kernel(pred_ref, target_ref, sum_d_ref, sum_d2_ref, *, row_tile):
    # init the per-split partial accumulators on the first reduction step
    @pl.when(pl.program_id(1) == 0)
    def _():
        sum_d_ref[...] = jnp.zeros_like(sum_d_ref)
        sum_d2_ref[...] = jnp.zeros_like(sum_d2_ref)

    p = pred_ref[...].astype(jnp.float32)
    t = target_ref[...].astype(jnp.float32)
    # two EUP logs (keeps the f32 divide off the VALU slot; matches torch ref)
    d = jnp.log(p + _EPS) - jnp.log(t)

    # pure-VPU fold into the resident (8, 128) accumulators; the expensive
    # cross-lane/sublane reduction happens once, outside the kernel.
    d3 = d.reshape(row_tile // _ACC_SUB, _ACC_SUB, _LANES)
    sum_d_ref[...] += d3.sum(axis=0)
    sum_d2_ref[...] += (d3 * d3).sum(axis=0)


def silog_loss_pallas(pred, target, *, lambd=0.85, loss_weight=1.0):
    assert pred.shape == target.shape, (pred.shape, target.shape)
    n = int(pred.size)
    assert n > 0

    dtype = pred.dtype
    itemsize = jnp.dtype(dtype).itemsize
    # sublane granularity of the hardware tile for this dtype
    sub = {4: 8, 2: 16, 1: 32}.get(itemsize, 8)

    # row-major reshape of a contiguous array -> bitcast, no HBM traffic
    pred_flat = pred.reshape(-1)
    target_flat = target.reshape(-1)

    full_rows = n // _LANES
    use_kernel = (n % _LANES == 0) and (full_rows >= sub)
    # TODO(synk): sizes that are not a multiple of 128 have no zero-copy 2-D
    # view; they fall back to the (equally mem-bound) XLA epilogue below.

    sum_d = jnp.float32(0.0)
    sum_d2 = jnp.float32(0.0)
    main_n = 0

    if use_kernel:
        # leading "parallel" axis: lets v7x shard the reduction across both TCs
        splits = 2 if full_rows >= 2 * sub else 1
        rows_per_split = full_rows // splits

        # pick (steps, row_tile) so the block-aligned prefix covers nearly all
        # rows (leftover < steps*sub rows per split) without exceeding the
        # per-generation block-size target.
        target_rows = _block_rows(sub)
        steps = -(-rows_per_split // target_rows)                 # ceil
        row_tile = max(sub, (rows_per_split // steps // sub) * sub)
        steps = rows_per_split // row_tile                        # floor, >= 1

        main_rows = splits * steps * row_tile
        main_n = main_rows * _LANES

        pred2d = pred_flat.reshape(full_rows, _LANES)             # bitcast
        target2d = target_flat.reshape(full_rows, _LANES)         # bitcast

        kernel = functools.partial(_silog_kernel, row_tile=row_tile)

        sums_d, sums_d2 = pl.pallas_call(
            kernel,
            out_shape=(
                jax.ShapeDtypeStruct((splits, _ACC_SUB, _LANES), jnp.float32),
                jax.ShapeDtypeStruct((splits, _ACC_SUB, _LANES), jnp.float32),
            ),
            grid_spec=pltpu.PrefetchScalarGridSpec(
                num_scalar_prefetch=0,
                grid=(splits, steps),
                in_specs=[
                    pl.BlockSpec((row_tile, _LANES),
                                 lambda c, i: (c * steps + i, 0)),
                    pl.BlockSpec((row_tile, _LANES),
                                 lambda c, i: (c * steps + i, 0)),
                ],
                out_specs=(
                    pl.BlockSpec((None, _ACC_SUB, _LANES),
                                 lambda c, i: (c, 0, 0)),
                    pl.BlockSpec((None, _ACC_SUB, _LANES),
                                 lambda c, i: (c, 0, 0)),
                ),
            ),
            compiler_params=pltpu.CompilerParams(
                dimension_semantics=("parallel", "arbitrary"),
                vmem_limit_bytes=48 * 1024 * 1024),
            cost_estimate=pl.CostEstimate(
                flops=6 * main_n,
                transcendentals=2 * main_n,
                bytes_accessed=2 * main_n * itemsize),
        )(pred2d, target2d)

        sum_d = jnp.sum(sums_d)
        sum_d2 = jnp.sum(sums_d2)

    if main_n < n:
        # small non-block-aligned tail (or full fallback) in plain JAX
        pt = pred_flat[main_n:].astype(jnp.float32)
        tt = target_flat[main_n:].astype(jnp.float32)
        dt = jnp.log(pt + _EPS) - jnp.log(tt)
        sum_d = sum_d + jnp.sum(dt)
        sum_d2 = sum_d2 + jnp.sum(dt * dt)

    inv_n = jnp.float32(1.0 / n)
    mean_d = sum_d * inv_n
    mean_d2 = sum_d2 * inv_n
    # clamp: guards NaN from fp rounding when mean(d^2) ~= lambd*mean(d)^2
    var = jnp.maximum(mean_d2 - jnp.float32(lambd) * mean_d * mean_d,
                      jnp.float32(0.0))
    return jnp.float32(loss_weight) * jnp.sqrt(var)


class SiLogLoss:
    """Pallas port of mmdet3d SiLogLoss (forward only)."""

    def __init__(self, loss_weight=1.0, lambd=0.85, loss_name='loss_silog'):
        self.loss_weight = float(loss_weight)
        self.lambd = float(lambd)
        self._loss_name = loss_name

    def __call__(self, pred, target, **kwargs):
        return silog_loss_pallas(
            pred, target, lambd=self.lambd, loss_weight=self.loss_weight)


def _silog_ref(pred, target, lambd=0.85, loss_weight=1.0):
    d = jnp.log(pred.astype(jnp.float32) + _EPS) - jnp.log(
        target.astype(jnp.float32))
    return loss_weight * jnp.sqrt(jnp.mean(d * d) - lambd * jnp.mean(d) ** 2)


if __name__ == "__main__":
    key = jax.random.PRNGKey(0)
    kp, kt, kp2, kt2 = jax.random.split(key, 4)
    loss_mod = SiLogLoss(loss_weight=1.0, lambd=0.85)

    # Primary: NCHW depth-like inputs (size divisible by 128 -> zero-copy path)
    shape = (2, 4, 16, 16)
    pred = jax.random.uniform(kp, shape, jnp.float32, minval=0.1, maxval=5.0)
    target = jax.random.uniform(kt, shape, jnp.float32, minval=0.1, maxval=5.0)
    out = jax.block_until_ready(loss_mod(pred, target))
    ref = _silog_ref(pred, target, lambd=0.85, loss_weight=1.0)
    assert jnp.allclose(out, ref, rtol=5e-5, atol=1e-6), (out, ref)

    # Secondary: row count not divisible by the block -> exercises the JAX tail
    shape2 = (17, 128)
    pred2 = jax.random.uniform(kp2, shape2, jnp.float32, minval=0.1, maxval=5.0)
    target2 = jax.random.uniform(kt2, shape2, jnp.float32, minval=0.1, maxval=5.0)
    out2 = jax.block_until_ready(loss_mod(pred2, target2))
    ref2 = _silog_ref(pred2, target2, lambd=0.85, loss_weight=1.0)
    assert jnp.allclose(out2, ref2, rtol=5e-5, atol=1e-6), (out2, ref2)

    print("KERNEL_OK")
</pallas_src>

<mosaic_0001>
module attributes {stable_mosaic.version = 11 : i64} {
  func.func @_silog_kernel(%arg0: i32, %arg1: i32, %arg2: memref<8x128xf32, #tpu.memory_space<vmem>>, %arg3: memref<8x128xf32, #tpu.memory_space<vmem>>, %arg4: memref<1x8x128xf32, #tpu.memory_space<vmem>>, %arg5: memref<1x8x128xf32, #tpu.memory_space<vmem>>) attributes {dimension_semantics = [#tpu.dimension_semantics<parallel>, #tpu.dimension_semantics<arbitrary>], iteration_bounds = array<i64: 2, 1>, scalar_prefetch = 0 : i64, scratch_operands = 0 : i64, tpu.core_type = #tpu.core_type<tc>, window_params = [{transform_indices = @transform_0, window_bounds = array<i64: 8, 128>}, {transform_indices = @transform_1, window_bounds = array<i64: 8, 128>}, {transform_indices = @transform_2, window_bounds = array<i64: 1, 8, 128>}, {transform_indices = @transform_3, window_bounds = array<i64: 1, 8, 128>}]} {
    %c0_i32 = arith.constant 0 : i32
    %0 = arith.cmpi eq, %arg1, %c0_i32 : i32
    %1 = arith.extui %0 : i1 to i32
    %c0_i32_0 = arith.constant 0 : i32
    %2 = arith.cmpi ne, %1, %c0_i32_0 : i32
    scf.if %2 {
      %cst_18 = arith.constant 0.000000e+00 : f32
      %26 = vector.broadcast %cst_18 : f32 to vector<8x128xf32>
      %c0_19 = arith.constant 0 : index
      %c0_20 = arith.constant 0 : index
      %c0_21 = arith.constant 0 : index
      %27 = vector.load %arg4[%c0_19, %c0_20, %c0_21] : memref<1x8x128xf32, #tpu.memory_space<vmem>>, vector<1x8x128xf32>
      %28 = vector.shape_cast %27 : vector<1x8x128xf32> to vector<8x128xf32>
      %29 = vector.shape_cast %26 : vector<8x128xf32> to vector<1x8x128xf32>
      tpu.vector_store %arg4[%c0_19, %c0_20, %c0_21], %29 {strides = array<i32>} : memref<1x8x128xf32, #tpu.memory_space<vmem>>, vector<1x8x128xf32>,
      %cst_22 = arith.constant 0.000000e+00 : f32
      %30 = vector.broadcast %cst_22 : f32 to vector<8x128xf32>
      %c0_23 = arith.constant 0 : index
      %c0_24 = arith.constant 0 : index
      %c0_25 = arith.constant 0 : index
      %31 = vector.load %arg5[%c0_23, %c0_24, %c0_25] : memref<1x8x128xf32, #tpu.memory_space<vmem>>, vector<1x8x128xf32>
      %32 = vector.shape_cast %31 : vector<1x8x128xf32> to vector<8x128xf32>
      %33 = vector.shape_cast %30 : vector<8x128xf32> to vector<1x8x128xf32>
      tpu.vector_store %arg5[%c0_23, %c0_24, %c0_25], %33 {strides = array<i32>} : memref<1x8x128xf32, #tpu.memory_space<vmem>>, vector<1x8x128xf32>,
    } else {
    }
    %c0 = arith.constant 0 : index
    %c0_1 = arith.constant 0 : index
    %3 = vector.load %arg2[%c0, %c0_1] : memref<8x128xf32, #tpu.memory_space<vmem>>, vector<8x128xf32>
    %c0_2 = arith.constant 0 : index
    %c0_3 = arith.constant 0 : index
    %4 = vector.load %arg3[%c0_2, %c0_3] : memref<8x128xf32, #tpu.memory_space<vmem>>, vector<8x128xf32>
    %cst = arith.constant 1.000000e-07 : f32
    %5 = vector.broadcast %cst : f32 to vector<8x128xf32>
    %6 = arith.addf %3, %5 : vector<8x128xf32>
    %7 = math.log %6 : vector<8x128xf32>
    %8 = math.log %4 : vector<8x128xf32>
    %9 = arith.subf %7, %8 : vector<8x128xf32>
    %10 = vector.shape_cast %9 : vector<8x128xf32> to vector<1x8x128xf32>
    %c0_4 = arith.constant 0 : index
    %c0_5 = arith.constant 0 : index
    %c0_6 = arith.constant 0 : index
    %11 = vector.load %arg4[%c0_4, %c0_5, %c0_6] : memref<1x8x128xf32, #tpu.memory_space<vmem>>, vector<1x8x128xf32>
    %12 = vector.shape_cast %11 : vector<1x8x128xf32> to vector<8x128xf32>
    %cst_7 = arith.constant dense<0.000000e+00> : vector<8x128xf32>
    %13 = vector.multi_reduction <add>, %10, %cst_7 [0] : vector<1x8x128xf32> to vector<8x128xf32>
    %14 = arith.addf %12, %13 : vector<8x128xf32>
    %c0_8 = arith.constant 0 : index
    %c0_9 = arith.constant 0 : index
    %c0_10 = arith.constant 0 : index
    %15 = vector.load %arg4[%c0_8, %c0_9, %c0_10] : memref<1x8x128xf32, #tpu.memory_space<vmem>>, vector<1x8x128xf32>
    %16 = vector.shape_cast %15 : vector<1x8x128xf32> to vector<8x128xf32>
    %17 = vector.shape_cast %14 : vector<8x128xf32> to vector<1x8x128xf32>
    tpu.vector_store %arg4[%c0_8, %c0_9, %c0_10], %17 {strides = array<i32>} : memref<1x8x128xf32, #tpu.memory_space<vmem>>, vector<1x8x128xf32>,
    %c0_11 = arith.constant 0 : index
    %c0_12 = arith.constant 0 : index
    %c0_13 = arith.constant 0 : index
    %18 = vector.load %arg5[%c0_11, %c0_12, %c0_13] : memref<1x8x128xf32, #tpu.memory_space<vmem>>, vector<1x8x128xf32>
    %19 = vector.shape_cast %18 : vector<1x8x128xf32> to vector<8x128xf32>
    %20 = arith.mulf %10, %10 : vector<1x8x128xf32>
    %cst_14 = arith.constant dense<0.000000e+00> : vector<8x128xf32>
    %21 = vector.multi_reduction <add>, %20, %cst_14 [0] : vector<1x8x128xf32> to vector<8x128xf32>
    %22 = arith.addf %19, %21 : vector<8x128xf32>
    %c0_15 = arith.constant 0 : index
    %c0_16 = arith.constant 0 : index
    %c0_17 = arith.constant 0 : index
    %23 = vector.load %arg5[%c0_15, %c0_16, %c0_17] : memref<1x8x128xf32, #tpu.memory_space<vmem>>, vector<1x8x128xf32>
    %24 = vector.shape_cast %23 : vector<1x8x128xf32> to vector<8x128xf32>
    %25 = vector.shape_cast %22 : vector<8x128xf32> to vector<1x8x128xf32>
    tpu.vector_store %arg5[%c0_15, %c0_16, %c0_17], %25 {strides = array<i32>} : memref<1x8x128xf32, #tpu.memory_space<vmem>>, vector<1x8x128xf32>,
    return
  }
  func.func @transform_0(%arg0: i32, %arg1: i32) -> (i32, i32) {
    %c1_i32 = arith.constant 1 : i32
    %0 = arith.muli %arg0, %c1_i32 : i32
    %1 = arith.addi %0, %arg1 : i32
    %c0_i32 = arith.constant 0 : i32
    %c0_i32_0 = arith.constant 0 : i32
    return %1, %c0_i32 : i32, i32
  }
  func.func @transform_1(%arg0: i32, %arg1: i32) -> (i32, i32) {
    %c1_i32 = arith.constant 1 : i32
    %0 = arith.muli %arg0, %c1_i32 : i32
    %1 = arith.addi %0, %arg1 : i32
    %c0_i32 = arith.constant 0 : i32
    %c0_i32_0 = arith.constant 0 : i32
    return %1, %c0_i32 : i32, i32
  }
  func.func @transform_2(%arg0: i32, %arg1: i32) -> (i32, i32, i32) {
    %c0_i32 = arith.constant 0 : i32
    %c0_i32_0 = arith.constant 0 : i32
    %c0_i32_1 = arith.constant 0 : i32
    return %arg0, %c0_i32, %c0_i32_0 : i32, i32, i32
  }
  func.func @transform_3(%arg0: i32, %arg1: i32) -> (i32, i32, i32) {
    %c0_i32 = arith.constant 0 : i32
    %c0_i32_0 = arith.constant 0 : i32
    %c0_i32_1 = arith.constant 0 : i32
    return %arg0, %c0_i32, %c0_i32_0 : i32, i32, i32
  }
}

</mosaic_0001>

<bundles_post_ra>
// kernel: tpu_custom_call.1
= control target key start
LH: loop header
LB: loop body
LE: loop exit
PB: predicated region body
PF: predicated region fallthrough
CT: control target
= control target key end

     0   :  { %9 = vsyncpa [#allocation3], 0  ;;  %s1003_s0 = inlined_call_operand.hbm [shape: f32[16,128], index: 0, kind: input, shape index: {}]   ;;  %s1004_s1 = inlined_call_operand.hbm [shape: f32[16,128], index: 1, kind: input, shape index: {}]   ;;  %s1005_s2 = inlined_call_operand.hbm [shape: f32[2,8,128], index: 2, kind: output, shape index: {0}]   ;;  %s1006_s3 = inlined_call_operand.hbm [shape: f32[2,8,128], index: 3, kind: output, shape index: {1}]  }
   0x1   :  { %11 = vsyncpa [#allocation3 + $0x1], 0 }
   0x2   :  { %12 = vsyncpa [#allocation6], 0 }
   0x3   :  { %14 = vsyncpa [#allocation6 + $0x1], 0 }
   0x4   :  { %15 = vsyncpa [#allocation4], 0 }
   0x5   :  { %17 = vsyncpa [#allocation4 + $0x1], 0 }
   0x6   :  { %18 = vsyncpa [#allocation9], 0 }
   0x7   :  { %20 = vsyncpa [#allocation9 + $0x1], 0  ;;  %s744_s12 = smov 0   ;;  %s746_s13 = smov 0  }
   0x8   :  { %s748_s14 = smov 0   ;;  %s750_s15 = smov 0  }
   0x9   :  { %s752_s16 = smov 0   ;;  %s754_s17 = smov 0  }
   0xa LB: > { %s444_s18 = sadd.s32 4294967295, %s718_s17   ;;  %s445_s19 = sadd.s32 4294967294, %s718_s17   ;;  %s718_s17 = sphi %s754_s17, %s26_s17   ;;  %s714_s16 = sphi %s752_s16, %s1026_s16   ;;  %s710_s15 = sphi %s750_s15, %s1025_s15   ;;  %s706_s14 = sphi %s748_s14, %s1024_s14   ;;  %s702_s13 = sphi %s746_s13, %s1023_s13   ;;  %s698_s12 = sphi %s744_s12, %s1022_s12  }
   0xb   : > { %s38_s20 = sadd.s32 1, %s714_s16  ;;  %s47_s21 = sadd.s32 1, %s706_s14 }
   0xc   : > { %p40_p0 = scmp.ge.s32.totalorder %s38_s20, 2  ;;  %p54_p1 = scmp.ne.s32.totalorder %s706_s14, %s702_s13 }
   0xd   : > { %p55_p2 = scmp.eq.s32.totalorder %s718_s17, 0  ;;  %p60_p3 = scmp.ne.s32.totalorder %s702_s13, %s698_s12 }
   0xe   : > { %s1028_s20 = smov (%p40_p0, %s38_s20), 0  ;;  %p61_p5 = scmp.eq.s32.totalorder %s444_s18, 0 }
   0xf   : > { %p785_p4 = por %p55_p2, %p54_p1  ;;  %s44_s23 = ssub.s32 %s714_s16, %s1028_s20 }
  0x10   : > { %p112_p6 = scmp.eq.s32.totalorder %s444_s18, 1  ;;  %p45_p7 = scmp.eq.s32.totalorder %s44_s23, 0 }
  0x11   : > { %p791_p8 = por %p61_p5, %p60_p3  ;;  %p118_p10 = scmp.eq.s32.totalorder %s445_s19, 1 }
  0x12   : > { %p795_p9 = por %p112_p6, %p54_p1  ;;  %p485_p13 = scmp.lt.s32.totalorder %s718_s17, 2 }
  0x13   : > { %s1010_s24 = scalar_select %p791_p8, 1, 0 }
  0x14   : > { %s1011_s25 = scalar_select %p795_p9, 1, 0 }
  0x15   : > { %s800_s26 = scalar_select %p45_p7, %s706_s14, %s47_s21  }
  0x16   : > { %p802_p11 = por %p118_p10, %p60_p3  ;;  %s809_s28 = sand.u32 1, %s706_s14  }
  0x17   : > { %s448_s29 = sshll.u32 %s809_s28, 3  ;;  %s449_s30 = sshll.u32 %s714_s16, 7 }
  0x18   : > { %s1012_s27 = scalar_select %p802_p11, 1, 0 }
  0x19   : > { %s818_s6 = scalar_lea.hbm %s1003_s0, %s449_s30  ;;  %s168_s7 = scalar_lea.vmem [#allocation2], %s448_s29 }
  0x1a   : > { %s176_s8 = sshll.u32 %s168_s7, 4  ;;  %p826_p0 = pnand %p485_p13, %p785_p4  ;;  %s822_s8 = int_to_ptr.vmem [resolvable:$true] %s176_s8 }
  0x1b   : > { %s165_s10 = scalar_lea.sflag [#allocation3], %s809_s28  ;;  %s540_s11 = scalar_lea.hbm %s818_s6, 128 }
  0x1c   : > { %p541_p3 = scmp.ne.s32.totalorder %s818_s6, %s540_s11  ;;  %p542_p5 = pneg %p826_p0 }
  0x1d   : > { %s545_s21 = scalar_lea.hbm %s1003_s0, 256  ;;  %p546_p4 = scmp.lt.u32.totalorder %s818_s6, %s1003_s0 }
  0x1e   : > { %p543_p6 = pnand %p542_p5, %p541_p3  ;;  %p547_p10 = scmp.lt.u32.totalorder %s545_s21, %s540_s11 }
  0x1f   : > { %p549_p12 = scmp.lt.u32.totalorder %s540_s11, %s818_s6 }
  0x20   : > { %p544_p7 = pneg %p543_p6  ;;  %p548_p13 = por %p547_p10, %p546_p4 }
  0x22   : > { %p550_p1 = por %p549_p12, %p548_p13 }
  0x24   : > { %p551_p2 = pnand %p550_p1, %p544_p7 }
  0x26   : > { %554 = shalt.err (!%p551_p2)
}
  0x27   : > { %s555_s4 = scalar_lea.vmem %s822_s8, 128  ;;  %s720_s5 = smov [#allocation2]  }
  0x28   : > { %p556_p3 = scmp.ne.s32.totalorder %s822_s8, %s555_s4  ;;  %s560_s7 = sshll.u32 %s720_s5, 4  ;;  %s561_s7 = int_to_ptr.vmem [resolvable:$false] %s560_s7 }
  0x29   : > { %s562_s18 = scalar_lea.vmem %s561_s7, 256  ;;  %p563_p9 = scmp.lt.s32.totalorder %s822_s8, %s561_s7 }
  0x2a   : > { %p558_p6 = pnand %p556_p3, %p542_p5  ;;  %p564_p4 = scmp.lt.s32.totalorder %s562_s18, %s555_s4 }
  0x2c   : > { %p559_p11 = pneg %p558_p6  ;;  %p565_p10 = por %p564_p4, %p563_p9 }
  0x2e   : > { %p566_p12 = pnand %p565_p10, %p559_p11 }
  0x30   : > { %569 = shalt.err (!%p566_p12)
}
  0x31   : > { %474 = dma.hbm_to_vmem [thread:$0]  (!%p826_p0), %s818_s6, 128, %s822_s8, %s165_s10  }
  0x32   : > { %p1014_p1 = scmp.lt.s32.totalorder %s718_s17, 3  ;;  %p1015_p2 = scmp.ge.s32.totalorder %s718_s17, 1 }
  0x33   : > { %s871_s22 = scalar_lea.hbm %s1004_s1, %s449_s30  ;;  %s187_s23 = scalar_lea.vmem [#allocation5], %s448_s29 }
  0x34   : > { %p862_p7 = pnand %p1015_p2, %p1014_p1  ;;  %s195_s4 = sshll.u32 %s187_s23, 4  ;;  %s196_s4 = int_to_ptr.vmem [resolvable:$true] %s195_s4 }
  0x35   : > { %s184_s6 = scalar_lea.sflag [#allocation6], %s809_s28  ;;  %s570_s8 = scalar_lea.hbm %s871_s22, 128 }
  0x36   : > { %s1016_s11 = scalar_select %p862_p7, 1, 0 }
  0x37   : > { %p571_p9 = scmp.ne.s32.totalorder %s871_s22, %s570_s8  ;;  %s575_s30 = scalar_lea.hbm %s1004_s1, 256 }
  0x38   : > { %p576_p3 = scmp.lt.u32.totalorder %s871_s22, %s1004_s1  ;;  %p577_p6 = scmp.lt.u32.totalorder %s575_s30, %s570_s8 }
  0x39   : > { %p573_p11 = pnand %p571_p9, %p542_p5  ;;  %p579_p10 = scmp.lt.u32.totalorder %s570_s8, %s871_s22 }
  0x3a   : > { %p578_p4 = por %p577_p6, %p576_p3 }
  0x3b   : > { %p574_p13 = pneg %p573_p11 }
  0x3c   : > { %p580_p12 = por %p579_p10, %p578_p4 }
  0x3e   : > { %p581_p1 = pnand %p580_p12, %p574_p13 }
  0x40   : > { %584 = shalt.err (!%p581_p1)
}
  0x41   : > { %s585_s28 = scalar_lea.vmem %s196_s4, 128  ;;  %s721_s29 = smov [#allocation5]  }
  0x42   : > { %p586_p2 = scmp.ne.s32.totalorder %s196_s4, %s585_s28  ;;  %s590_s19 = sshll.u32 %s721_s29, 4  ;;  %s591_s19 = int_to_ptr.vmem [resolvable:$false] %s590_s19 }
  0x43   : > { %s592_s21 = scalar_lea.vmem %s591_s19, 256  ;;  %p593_p8 = scmp.lt.s32.totalorder %s196_s4, %s591_s19 }
  0x44   : > { %p588_p9 = pnand %p586_p2, %p542_p5  ;;  %p594_p7 = scmp.lt.s32.totalorder %s592_s21, %s585_s28 }
  0x46   : > { %p589_p11 = pneg %p588_p9  ;;  %p595_p3 = por %p594_p7, %p593_p8 }
  0x48   : > { %p596_p6 = pnand %p595_p3, %p589_p11 }
  0x4a   : > { %599 = shalt.err (!%p596_p6)
}
  0x4b   : > { %477 = dma.hbm_to_vmem [thread:$0]  (!%p826_p0), %s871_s22, 128, %s196_s4, %s184_s6  }
  0x4c   : > { %p1017_p13 = scmp.ne.s32.totalorder %s1016_s11, 0 }
  0x4d   : > { %s898_s23 = sand.u32 (!%p1017_p13), 1, %s702_s13   ;;  %p1018_p8 = scmp.ne.s32.totalorder (!%p1017_p13), %s1010_s24, 0 }
  0x4e   : > { %204 = sbr.rel (%p1017_p13) target bundleno = 143 (0x8f), region = 28  ;;  %s901_s8 = sshll.u32 (!%p1017_p13), %s898_s23, 3 }
  0x4f   : > { %s207_s10 = scalar_lea.sflag (!%p1017_p13), [#allocation3], %s898_s23  ;;  %s210_s5 = scalar_lea.vmem (!%p1017_p13), [#allocation2], %s901_s8 }
  0x55   : > { %681 = dma.done.wait (%p1018_p8), %s207_s10, 128  }
  0x56   : > { %683 = vsyncadd (%p1018_p8), %s207_s10, 4294967168  ;;  %s216_s9 = scalar_lea.sflag [#allocation6], %s898_s23  ;;  %s219_s11 = scalar_lea.vmem [#allocation5], %s901_s8 }
  0x57   : > { %685 = dma.done.wait (%p1018_p8), %s216_s9, 128  }
  0x58   : > { %687 = vsyncadd (%p1018_p8), %s216_s9, 4294967168  ;;  %v260_v0 = vld [vmem:[%s210_s5] sm:$0xff]  ;;  %v261_v1 = vld [vmem:[%s219_s11] sm:$0xff]  ;;  %s459_s22 = sshll.u32 %s710_s15, 7  ;;  %s244_s4 = scalar_lea.vmem [#allocation7], %s901_s8 }
  0x59   : > { %v262_v2 = vadd.f32 1e-07, %v260_v0  ;;  %536 = vlog2.f32 %v261_v1  ;;  %s296_s6 = sshll.u32 %s244_s4, 4  ;;  %s251_s24 = scalar_lea.vmem [#allocation8], %s901_s8  ;;  %s925_s6 = int_to_ptr.vmem [resolvable:$true] %s296_s6 }
  0x5a   : > { %s309_s30 = sshll.u32 %s251_s24, 4  ;;  %s923_s28 = scalar_lea.hbm %s1005_s2, %s459_s22  ;;  %s932_s30 = int_to_ptr.vmem [resolvable:$true] %s309_s30 }
  0x5b   : > { %538 = vlog2.f32 %v262_v2  ;;  %s930_s19 = scalar_lea.hbm %s1006_s3, %s459_s22  ;;  %s278_s21 = scalar_lea.sflag [#allocation4], %s898_s23 }
  0x5c   : > { %s600_s10 = scalar_lea.vmem %s925_s6, 128  ;;  %p1019_p5 = scmp.ne.s32.totalorder %s1011_s25, 0 }
  0x5d   : > { %p601_p0 = scmp.ne.s32.totalorder %s925_s6, %s600_s10  ;;  %s722_s5 = smov [#allocation7]  }
  0x5e   : > { %s604_s9 = sshll.u32 %s722_s5, 4  ;;  %s605_s9 = int_to_ptr.vmem [resolvable:$false] %s604_s9 }
  0x5f   : > { %p602_p7 = pnand %p601_p0, %p1019_p5  ;;  %s606_s11 = scalar_lea.vmem %s605_s9, 256 }
  0x60   : > { %p607_p10 = scmp.lt.s32.totalorder %s925_s6, %s605_s9  ;;  %p608_p12 = scmp.lt.s32.totalorder %s606_s11, %s600_s10 }
  0x61   : > { %p603_p4 = pneg %p602_p7 }
  0x62   : > { %p609_p1 = por %p608_p12, %p607_p10 }
  0x63   : > { %v537_v3 = vpop.eup %536 }
  0x64   : > { %v266_v4 = vmul.f32 0.6931472, %v537_v3  ;;  %p610_p2 = pnand %p609_p1, %p603_p4 }
  0x65   : > { %v539_v5 = vpop.eup %538 }
  0x66   : > { %v264_v6 = vmul.f32 0.6931472, %v539_v5 }
  0x68   : > { %v267_v7 = vsub.f32 %v264_v6, %v266_v4 }
  0x6a   : > { %v273_v8 = vmul.f32 %v267_v7, %v267_v7  ;;  %271 = vst [vmem:[%s244_s4] sm:$0xff] %v267_v7 }
  0x6b   : > { %613 = shalt.err (!%p610_p2)
}
  0x6c   : > { %s614_s22 = scalar_lea.hbm %s923_s28, 128  ;;  %s618_s18 = scalar_lea.hbm %s1005_s2, 256 }
  0x6d   : > { %p615_p9 = scmp.ne.s32.totalorder %s923_s28, %s614_s22  ;;  %p619_p6 = scmp.lt.u32.totalorder %s923_s28, %s1005_s2 }
  0x6e   : > { %p620_p13 = scmp.lt.u32.totalorder %s618_s18, %s614_s22  ;;  %p622_p0 = scmp.lt.u32.totalorder %s614_s22, %s923_s28 }
  0x6f   : > { %p616_p11 = pnand %p615_p9, %p1019_p5 }
  0x70   : > { %p621_p8 = por %p620_p13, %p619_p6 }
  0x71   : > { %p617_p3 = pneg %p616_p11 }
  0x72   : > { %p623_p7 = por %p622_p0, %p621_p8 }
  0x74   : > { %p624_p4 = pnand %p623_p7, %p617_p3 }
  0x76   : > { %627 = shalt.err (!%p624_p4)
}
  0x77   : > { %467 = dma.vmem_to_hbm [thread:$0]  (%p1019_p5), %s925_s6, 128, %s923_s28, %s278_s21   ;;  %276 = vst [vmem:[%s251_s24] sm:$0xff] %v273_v8 }
  0x78   : > { %s283_s10 = scalar_lea.sflag [#allocation9], %s898_s23  ;;  %s628_s5 = scalar_lea.vmem %s932_s30, 128 }
  0x79   : > { %p629_p10 = scmp.ne.s32.totalorder %s932_s30, %s628_s5  ;;  %s723_s9 = smov [#allocation8]  }
  0x7a   : > { %s632_s11 = sshll.u32 %s723_s9, 4  ;;  %s633_s11 = int_to_ptr.vmem [resolvable:$false] %s632_s11 }
  0x7b   : > { %p630_p12 = pnand %p629_p10, %p1019_p5  ;;  %s634_s22 = scalar_lea.vmem %s633_s11, 256 }
  0x7c   : > { %p635_p2 = scmp.lt.s32.totalorder %s932_s30, %s633_s11  ;;  %p636_p9 = scmp.lt.s32.totalorder %s634_s22, %s628_s5 }
  0x7d   : > { %p631_p1 = pneg %p630_p12 }
  0x7e   : > { %p637_p11 = por %p636_p9, %p635_p2 }
  0x80   : > { %p638_p3 = pnand %p637_p11, %p631_p1 }
  0x82   : > { %641 = shalt.err (!%p638_p3)
}
  0x83   : > { %s642_s23 = scalar_lea.hbm %s930_s19, 128  ;;  %s646_s24 = scalar_lea.hbm %s1006_s3, 256 }
  0x84   : > { %p643_p6 = scmp.ne.s32.totalorder %s930_s19, %s642_s23  ;;  %p647_p0 = scmp.lt.u32.totalorder %s930_s19, %s1006_s3 }
  0x85   : > { %p648_p7 = scmp.lt.u32.totalorder %s646_s24, %s642_s23  ;;  %p650_p10 = scmp.lt.u32.totalorder %s642_s23, %s930_s19 }
  0x86   : > { %p644_p13 = pnand %p643_p6, %p1019_p5 }
  0x87   : > { %p649_p4 = por %p648_p7, %p647_p0 }
  0x88   : > { %p645_p8 = pneg %p644_p13 }
  0x89   : > { %p651_p12 = por %p650_p10, %p649_p4 }
  0x8b   : > { %p652_p1 = pnand %p651_p12, %p645_p8 }
  0x8d   : > { %655 = shalt.err (!%p652_p1)
}
  0x8e   : > { %468 = dma.vmem_to_hbm [thread:$0]  (%p1019_p5), %s932_s30, 128, %s930_s19, %s283_s10  }
  0x8f PF: > { %s321_s4 = sand.u32 1, %s698_s12   ;;  %p1020_p2 = scmp.ne.s32.totalorder %s1012_s27, 0 }
  0x90   : > { %p1021_p9 = scmp.ge.s32.totalorder %s718_s17, 2  ;;  %s322_s7 = scalar_lea.sflag [#allocation4], %s321_s4 }
  0x92   : > { %p479_p11 = pnand %p1021_p9, %p1020_p2 }
  0x94   : > { %689 = dma.done.wait (!%p479_p11), %s322_s7, 128  }
  0x95   : > { %691 = vsyncadd (!%p479_p11), %s322_s7, 4294967168  ;;  %s331_s18 = scalar_lea.sflag [#allocation9], %s321_s4 }
  0x96   : > { %693 = dma.done.wait (!%p479_p11), %s331_s18, 128  }
  0x97   : > { %695 = vsyncadd (!%p479_p11), %s331_s18, 4294967168  ;;  %s26_s17 = sadd.s32 1, %s718_s17   ;;  %s1022_s12 = smov %s702_s13 }
  0x98   : > { %p23_p3 = scmp.ge.s32.totalorder %s26_s17, 4   ;;  %s1023_s13 = smov %s706_s14 }
  0x99   : > { %s1024_s14 = smov %s800_s26  ;;  %s1025_s15 = smov %s714_s16 }
  0x9a   : > { %s1026_s16 = smov %s1028_s20  ;;  %25 = sbr.rel (!%p23_p3) target bundleno = 10 (0xa), region = 107 }
  0xa1   :  { %336 = vsyncpa [#allocation3], 1 }
  0xa2   :  { %338 = vsyncpa [#allocation3 + $0x1], 1 }
  0xa3   :  { %339 = vsyncpa [#allocation6], 1 }
  0xa4   :  { %341 = vsyncpa [#allocation6 + $0x1], 1 }
  0xa5   :  { %342 = vsyncpa [#allocation4], 1 }
  0xa6   :  { %344 = vsyncpa [#allocation4 + $0x1], 1 }
  0xa7   :  { %345 = vsyncpa [#allocation9], 1 }
  0xa8   :  { %347 = vsyncpa [#allocation9 + $0x1], 1 }

</bundles_post_ra>
